<compile_context>
chip_gen: v7x
topology: tpu7x:2x2x1
jax: 0.10.0
libtpu: 0.0.40
codegen_flags: <defaults>
</compile_context>

<pallas_src>
import functools

import jax
import jax.numpy as jnp
from jax import lax
from jax.experimental import pallas as pl
from jax.experimental.pallas import tpu as pltpu


def _round_up(a, b):
    return (a + b - 1) // b * b


def _default_compute_dtype():
    """bf16 activations only where the VPU/EUP are bf16-capable (v6e, v7x)."""
    try:
        kind = jax.devices()[0].device_kind.lower()
    except Exception:
        return jnp.float32
    if ("v6" in kind) or ("v7" in kind) or ("7x" in kind):
        return jnp.bfloat16
    return jnp.float32


def _pinn_kernel(x_ref, *refs, depth, input_size, num_chunks, compute_dtype):
    """Fused MLP forward in batch-on-lanes layout.

    refs = (W_in, b_in, W_h0, b_h0, ..., W_h{depth-1}, b_h{depth-1},
            W_out, b_out, out_ref)

    Shapes (per grid step):
      x_ref : [input_size, tile_n]      (f32)
      W_in  : [hidden, input_size]      (f32, used on the VPU)
      W_h/W_out : [out_f, in_f]         (compute_dtype)
      b     : [out_f, 1]                (f32, broadcast over lanes)
      out   : [output_size, tile_n]     (f32)
    """
    out_ref = refs[-1]
    params = refs[:-1]

    tile_n = x_ref.shape[-1]
    chunk_n = tile_n // num_chunks

    w_in = params[0][...]                # [hidden, input_size] f32
    b_in = params[1][...]                # [hidden, 1] f32
    w_out = params[-2][...]              # [output_size, hidden] compute_dtype
    b_out = params[-1][...]              # [output_size, 1] f32

    # Static per-chunk loop: independent chains let the scheduler hide MXU /
    # VALU / store work of one chunk under the EUP tanh drain of another.
    for c in range(num_chunks):
        lo = c * chunk_n                 # static, multiple of 128
        x = x_ref[:, lo:lo + chunk_n]    # [input_size, chunk_n] f32

        if input_size <= 8:
            # K is tiny: skip the MXU, do the contraction as VPU broadcast FMAs.
            z = w_in[:, 0:1] * x[0:1, :]
            for k in range(1, input_size):
                z = z + w_in[:, k:k + 1] * x[k:k + 1, :]
        else:
            z = jnp.dot(w_in, x, preferred_element_type=jnp.float32)

        # Single-EUP tanh; bf16 input on v6e/v7x doubles EUP throughput.
        h = lax.tanh((z + b_in).astype(compute_dtype))     # [hidden, chunk_n]

        for i in range(depth):
            w = params[2 + 2 * i][...]   # [hidden, hidden] compute_dtype
            b = params[3 + 2 * i][...]   # [hidden, 1] f32
            zi = jnp.dot(w, h, preferred_element_type=jnp.float32) + b
            h = lax.tanh(zi.astype(compute_dtype))

        out_ref[:, lo:lo + chunk_n] = (
            jnp.dot(w_out, h, preferred_element_type=jnp.float32) + b_out
        ).astype(out_ref.dtype)


def init_pinn_params(key, input_size, hidden_size, output_size, depth,
                     dtype=jnp.float32):
    """Xavier-normal weights ([out, in], torch convention), zero biases ([out, 1])."""
    dims = [input_size] + [hidden_size] * (depth + 1) + [output_size]
    params = []
    for fan_in, fan_out in zip(dims[:-1], dims[1:]):
        key, sub = jax.random.split(key)
        std = (2.0 / (fan_in + fan_out)) ** 0.5  # xavier_normal_, gain=1
        w = std * jax.random.normal(sub, (fan_out, fan_in), dtype=dtype)
        b = jnp.zeros((fan_out, 1), dtype=dtype)
        params.append((w, b))
    return params


def pinn_forward(x, params, *, tile_n=8192, compute_dtype=None,
                 batch_last=False):
    """Fused PINN MLP forward.

    x: [N, input_size] (torch layout) or, with batch_last=True, [input_size, N]
       (skips the wrapper-side relayout entirely).
    Returns (u, v, p), each [N] float32.
    """
    if batch_last:
        input_size, N = x.shape
    else:
        N, input_size = x.shape
    depth = len(params) - 2
    output_size = params[-1][0].shape[0]
    if compute_dtype is None:
        compute_dtype = _default_compute_dtype()

    LANE = 128
    n_pad_lane = _round_up(N, LANE)
    tile_n = max(LANE, min(_round_up(tile_n, LANE), n_pad_lane))
    # Aim for >= 8 grid steps (input/output DMA pipelining + both v7x TCs),
    # falling back to >= 2, but never shrink a tile below 2048 lanes for it.
    for steps in (8, 2):
        cap = _round_up(pl.cdiv(n_pad_lane, steps), LANE)
        if cap >= 2048:
            tile_n = min(tile_n, cap)
            break
    n_pad = _round_up(N, tile_n)
    grid = n_pad // tile_n

    # Sub-chunking inside the kernel (>= 512 lanes per chunk, lane-aligned).
    num_chunks = 1
    for c in (4, 2):
        cn = tile_n // c
        if tile_n % c == 0 and cn % LANE == 0 and cn >= 512:
            num_chunks = c
            break

    # Batch-on-lanes input: [input_size, n_pad]; padded columns are discarded.
    if batch_last:
        xt = x if n_pad == N else jnp.pad(x, ((0, 0), (0, n_pad - N)))
    else:
        xt = (x if n_pad == N else jnp.pad(x, ((0, n_pad - N), (0, 0)))).T

    # First-layer weight/bias and all biases stay f32 (VPU FMAs / f32 adds are
    # nearly free); hidden & output weights carry the compute dtype.
    flat_params = []
    for li, (w, b) in enumerate(params):
        w_dt = jnp.float32 if li == 0 else compute_dtype
        flat_params.append(w.astype(w_dt))
        flat_params.append(b.astype(jnp.float32))

    in_specs = [pl.BlockSpec((input_size, tile_n), lambda i: (0, i))]
    for p_arr in flat_params:
        # Tiny weights/biases: full array resident in VMEM every step.
        in_specs.append(pl.BlockSpec(p_arr.shape, lambda i: (0, 0)))

    out = pl.pallas_call(
        functools.partial(_pinn_kernel, depth=depth, input_size=input_size,
                          num_chunks=num_chunks, compute_dtype=compute_dtype),
        out_shape=jax.ShapeDtypeStruct((output_size, n_pad), jnp.float32),
        grid_spec=pltpu.PrefetchScalarGridSpec(
            num_scalar_prefetch=0,
            grid=(grid,),
            in_specs=in_specs,
            out_specs=pl.BlockSpec((output_size, tile_n), lambda i: (0, i)),
        ),
        compiler_params=pltpu.CompilerParams(
            dimension_semantics=("parallel",)),
    )(xt, *flat_params)

    # Lane-dense output: the (u, v, p) split is a contiguous row slice.
    u, v, p = out[0, :N], out[1, :N], out[2, :N]
    return u, v, p


def _reference_forward(x, params):
    """Plain-JAX reference in the torch row-major layout."""
    h = x
    for i, (w, b) in enumerate(params):
        h = h @ w.T + b[:, 0]
        if i < len(params) - 1:
            h = jnp.tanh(h)
    return h[:, 0], h[:, 1], h[:, 2]


if __name__ == "__main__":
    # Small shapes consistent with a PINN over (x, y) collocation points:
    # input_size=2, hidden_size=32, output_size=3 (u, v, p), depth=2.
    # N is deliberately NOT a multiple of 128 to exercise the padded path.
    input_size, hidden_size, output_size, depth = 2, 32, 3, 2
    N = 300

    key = jax.random.PRNGKey(0)
    key, kx = jax.random.split(key)
    x = jax.random.uniform(kx, (N, input_size), dtype=jnp.float32)
    params = init_pinn_params(key, input_size, hidden_size, output_size, depth)

    u_r, v_r, p_r = _reference_forward(x, params)

    # 1) f32 path (all generations): tight check against the JAX reference.
    u, v, p = pinn_forward(x, params, compute_dtype=jnp.float32)
    jax.block_until_ready((u, v, p))
    assert u.shape == (N,) and v.shape == (N,) and p.shape == (N,)
    assert jnp.allclose(u, u_r, atol=1e-5, rtol=1e-5)
    assert jnp.allclose(v, v_r, atol=1e-5, rtol=1e-5)
    assert jnp.allclose(p, p_r, atol=1e-5, rtol=1e-5)

    # 2) Pre-transposed input path ([input_size, N]) — skips wrapper relayout.
    u_t, v_t, p_t = pinn_forward(x.T, params, compute_dtype=jnp.float32,
                                 batch_last=True)
    jax.block_until_ready((u_t, v_t, p_t))
    assert jnp.allclose(u_t, u, atol=1e-6, rtol=1e-6)
    assert jnp.allclose(v_t, v, atol=1e-6, rtol=1e-6)
    assert jnp.allclose(p_t, p, atol=1e-6, rtol=1e-6)

    # 3) Auto dtype (bf16 activations on v6e/v7x, f32 elsewhere): looser check
    #    when bf16 is selected, since activations are quantized.
    u_a, v_a, p_a = pinn_forward(x, params)
    jax.block_until_ready((u_a, v_a, p_a))
    tol = 1e-5 if _default_compute_dtype() == jnp.float32 else 5e-2
    assert jnp.allclose(u_a, u_r, atol=tol, rtol=tol)
    assert jnp.allclose(v_a, v_r, atol=tol, rtol=tol)
    assert jnp.allclose(p_a, p_r, atol=tol, rtol=tol)

    print("KERNEL_OK")
</pallas_src>

<mosaic_0001>
module attributes {stable_mosaic.version = 11 : i64} {
  func.func @_pinn_kernel(%arg0: i32, %arg1: memref<2x384xf32, #tpu.memory_space<vmem>>, %arg2: memref<32x2xf32, #tpu.memory_space<vmem>>, %arg3: memref<32x1xf32, #tpu.memory_space<vmem>>, %arg4: memref<32x32xf32, #tpu.memory_space<vmem>>, %arg5: memref<32x1xf32, #tpu.memory_space<vmem>>, %arg6: memref<32x32xf32, #tpu.memory_space<vmem>>, %arg7: memref<32x1xf32, #tpu.memory_space<vmem>>, %arg8: memref<3x32xf32, #tpu.memory_space<vmem>>, %arg9: memref<3x1xf32, #tpu.memory_space<vmem>>, %arg10: memref<3x384xf32, #tpu.memory_space<vmem>>) attributes {dimension_semantics = [#tpu.dimension_semantics<parallel>], iteration_bounds = array<i64: 1>, scalar_prefetch = 0 : i64, scratch_operands = 0 : i64, tpu.core_type = #tpu.core_type<tc>, window_params = [{transform_indices = @transform_0, window_bounds = array<i64: 2, 384>}, {pipeline_mode = #tpu.pipeline_mode<synchronous>, transform_indices = @transform_1, window_bounds = array<i64: 32, 2>}, {pipeline_mode = #tpu.pipeline_mode<synchronous>, transform_indices = @transform_2, window_bounds = array<i64: 32, 1>}, {pipeline_mode = #tpu.pipeline_mode<synchronous>, transform_indices = @transform_3, window_bounds = array<i64: 32, 32>}, {pipeline_mode = #tpu.pipeline_mode<synchronous>, transform_indices = @transform_4, window_bounds = array<i64: 32, 1>}, {pipeline_mode = #tpu.pipeline_mode<synchronous>, transform_indices = @transform_5, window_bounds = array<i64: 32, 32>}, {pipeline_mode = #tpu.pipeline_mode<synchronous>, transform_indices = @transform_6, window_bounds = array<i64: 32, 1>}, {pipeline_mode = #tpu.pipeline_mode<synchronous>, transform_indices = @transform_7, window_bounds = array<i64: 3, 32>}, {pipeline_mode = #tpu.pipeline_mode<synchronous>, transform_indices = @transform_8, window_bounds = array<i64: 3, 1>}, {transform_indices = @transform_9, window_bounds = array<i64: 3, 384>}]} {
    %c0 = arith.constant 0 : index
    %c0_0 = arith.constant 0 : index
    %0 = vector.load %arg2[%c0, %c0_0] : memref<32x2xf32, #tpu.memory_space<vmem>>, vector<32x2xf32>
    %c0_1 = arith.constant 0 : index
    %c0_2 = arith.constant 0 : index
    %1 = vector.load %arg3[%c0_1, %c0_2] : memref<32x1xf32, #tpu.memory_space<vmem>>, vector<32x1xf32>
    %c0_3 = arith.constant 0 : index
    %c0_4 = arith.constant 0 : index
    %2 = vector.load %arg8[%c0_3, %c0_4] : memref<3x32xf32, #tpu.memory_space<vmem>>, vector<3x32xf32>
    %c0_5 = arith.constant 0 : index
    %c0_6 = arith.constant 0 : index
    %3 = vector.load %arg9[%c0_5, %c0_6] : memref<3x1xf32, #tpu.memory_space<vmem>>, vector<3x1xf32>
    %c0_7 = arith.constant 0 : index
    %c0_8 = arith.constant 0 : index
    %4 = vector.load %arg1[%c0_7, %c0_8] : memref<2x384xf32, #tpu.memory_space<vmem>>, vector<2x384xf32>
    %5 = vector.extract_strided_slice %0 {offsets = [0, 0], sizes = [32, 1], strides = [1, 1]} : vector<32x2xf32> to vector<32x1xf32>
    %6 = vector.extract_strided_slice %4 {offsets = [0, 0], sizes = [1, 384], strides = [1, 1]} : vector<2x384xf32> to vector<1x384xf32>
    %7 = vector.broadcast %5 : vector<32x1xf32> to vector<32x384xf32>
    %8 = vector.broadcast %6 : vector<1x384xf32> to vector<32x384xf32>
    %9 = arith.mulf %7, %8 : vector<32x384xf32>
    %10 = vector.extract_strided_slice %0 {offsets = [0, 1], sizes = [32, 1], strides = [1, 1]} : vector<32x2xf32> to vector<32x1xf32>
    %11 = vector.extract_strided_slice %4 {offsets = [1, 0], sizes = [1, 384], strides = [1, 1]} : vector<2x384xf32> to vector<1x384xf32>
    %12 = vector.broadcast %10 : vector<32x1xf32> to vector<32x384xf32>
    %13 = vector.broadcast %11 : vector<1x384xf32> to vector<32x384xf32>
    %14 = arith.mulf %12, %13 : vector<32x384xf32>
    %15 = arith.addf %9, %14 : vector<32x384xf32>
    %16 = vector.broadcast %1 : vector<32x1xf32> to vector<32x384xf32>
    %17 = arith.addf %15, %16 : vector<32x384xf32>
    %18 = math.tanh %17 : vector<32x384xf32>
    %c0_9 = arith.constant 0 : index
    %c0_10 = arith.constant 0 : index
    %19 = vector.load %arg4[%c0_9, %c0_10] : memref<32x32xf32, #tpu.memory_space<vmem>>, vector<32x32xf32>
    %c0_11 = arith.constant 0 : index
    %c0_12 = arith.constant 0 : index
    %20 = vector.load %arg5[%c0_11, %c0_12] : memref<32x1xf32, #tpu.memory_space<vmem>>, vector<32x1xf32>
    %cst = arith.constant dense<0.000000e+00> : vector<32x384xf32>
    %21 = tpu.matmul %19, %18, %cst {dimension_numbers = #tpu.dot_dimension_numbers<[1], [0], [0], [1], [0, 0, 1, 1], [], []>} : vector<32x32xf32>, vector<32x384xf32>, vector<32x384xf32> -> vector<32x384xf32>
    %22 = vector.broadcast %20 : vector<32x1xf32> to vector<32x384xf32>
    %23 = arith.addf %21, %22 : vector<32x384xf32>
    %24 = math.tanh %23 : vector<32x384xf32>
    %c0_13 = arith.constant 0 : index
    %c0_14 = arith.constant 0 : index
    %25 = vector.load %arg6[%c0_13, %c0_14] : memref<32x32xf32, #tpu.memory_space<vmem>>, vector<32x32xf32>
    %c0_15 = arith.constant 0 : index
    %c0_16 = arith.constant 0 : index
    %26 = vector.load %arg7[%c0_15, %c0_16] : memref<32x1xf32, #tpu.memory_space<vmem>>, vector<32x1xf32>
    %cst_17 = arith.constant dense<0.000000e+00> : vector<32x384xf32>
    %27 = tpu.matmul %25, %24, %cst_17 {dimension_numbers = #tpu.dot_dimension_numbers<[1], [0], [0], [1], [0, 0, 1, 1], [], []>} : vector<32x32xf32>, vector<32x384xf32>, vector<32x384xf32> -> vector<32x384xf32>
    %28 = vector.broadcast %26 : vector<32x1xf32> to vector<32x384xf32>
    %29 = arith.addf %27, %28 : vector<32x384xf32>
    %30 = math.tanh %29 : vector<32x384xf32>
    %cst_18 = arith.constant dense<0.000000e+00> : vector<3x384xf32>
    %31 = tpu.matmul %2, %30, %cst_18 {dimension_numbers = #tpu.dot_dimension_numbers<[1], [0], [0], [1], [0, 0, 1, 1], [], []>} : vector<3x32xf32>, vector<32x384xf32>, vector<3x384xf32> -> vector<3x384xf32>
    %32 = vector.broadcast %3 : vector<3x1xf32> to vector<3x384xf32>
    %33 = arith.addf %31, %32 : vector<3x384xf32>
    %c0_19 = arith.constant 0 : index
    %c0_20 = arith.constant 0 : index
    %34 = vector.load %arg10[%c0_19, %c0_20] : memref<3x384xf32, #tpu.memory_space<vmem>>, vector<3x384xf32>
    tpu.vector_store %arg10[%c0_19, %c0_20], %33 {strides = array<i32>} : memref<3x384xf32, #tpu.memory_space<vmem>>, vector<3x384xf32>,
    return
  }
  func.func @transform_0(%arg0: i32) -> (i32, i32) {
    %c0_i32 = arith.constant 0 : i32
    %c0_i32_0 = arith.constant 0 : i32
    return %c0_i32, %arg0 : i32, i32
  }
  func.func @transform_1(%arg0: i32) -> (i32, i32) {
    %c0_i32 = arith.constant 0 : i32
    %c0_i32_0 = arith.constant 0 : i32
    %c0_i32_1 = arith.constant 0 : i32
    return %c0_i32, %c0_i32_0 : i32, i32
  }
  func.func @transform_2(%arg0: i32) -> (i32, i32) {
    %c0_i32 = arith.constant 0 : i32
    %c0_i32_0 = arith.constant 0 : i32
    %c0_i32_1 = arith.constant 0 : i32
    return %c0_i32, %c0_i32_0 : i32, i32
  }
  func.func @transform_3(%arg0: i32) -> (i32, i32) {
    %c0_i32 = arith.constant 0 : i32
    %c0_i32_0 = arith.constant 0 : i32
    %c0_i32_1 = arith.constant 0 : i32
    return %c0_i32, %c0_i32_0 : i32, i32
  }
  func.func @transform_4(%arg0: i32) -> (i32, i32) {
    %c0_i32 = arith.constant 0 : i32
    %c0_i32_0 = arith.constant 0 : i32
    %c0_i32_1 = arith.constant 0 : i32
    return %c0_i32, %c0_i32_0 : i32, i32
  }
  func.func @transform_5(%arg0: i32) -> (i32, i32) {
    %c0_i32 = arith.constant 0 : i32
    %c0_i32_0 = arith.constant 0 : i32
    %c0_i32_1 = arith.constant 0 : i32
    return %c0_i32, %c0_i32_0 : i32, i32
  }
  func.func @transform_6(%arg0: i32) -> (i32, i32) {
    %c0_i32 = arith.constant 0 : i32
    %c0_i32_0 = arith.constant 0 : i32
    %c0_i32_1 = arith.constant 0 : i32
    return %c0_i32, %c0_i32_0 : i32, i32
  }
  func.func @transform_7(%arg0: i32) -> (i32, i32) {
    %c0_i32 = arith.constant 0 : i32
    %c0_i32_0 = arith.constant 0 : i32
    %c0_i32_1 = arith.constant 0 : i32
    return %c0_i32, %c0_i32_0 : i32, i32
  }
  func.func @transform_8(%arg0: i32) -> (i32, i32) {
    %c0_i32 = arith.constant 0 : i32
    %c0_i32_0 = arith.constant 0 : i32
    %c0_i32_1 = arith.constant 0 : i32
    return %c0_i32, %c0_i32_0 : i32, i32
  }
  func.func @transform_9(%arg0: i32) -> (i32, i32) {
    %c0_i32 = arith.constant 0 : i32
    %c0_i32_0 = arith.constant 0 : i32
    return %c0_i32, %arg0 : i32, i32
  }
}

</mosaic_0001>

<bundles_post_ra>
// kernel: tpu_custom_call.1
= control target key start
LH: loop header
LB: loop body
LE: loop exit
PB: predicated region body
PF: predicated region fallthrough
CT: control target
= control target key end

     0   :  { %v1069_v2 = vmov 1   ;;  %v1070_v4 = vmov 0   ;;  %s1254_s0 = inlined_call_operand.vmem [shape: f32[2,384], index: 0, kind: input, shape index: {}]   ;;  %s1255_s1 = inlined_call_operand.vmem [shape: f32[32,2], index: 1, kind: input, shape index: {}]   ;;  %s1256_s2 = inlined_call_operand.vmem [shape: f32[32,1], index: 2, kind: input, shape index: {}]   ;;  %s1257_s3 = inlined_call_operand.vmem [shape: f32[32,32], index: 3, kind: input, shape index: {}]   ;;  %s1258_s4 = inlined_call_operand.vmem [shape: f32[32,1], index: 4, kind: input, shape index: {}]   ;;  %s1259_s5 = inlined_call_operand.vmem [shape: f32[32,32], index: 5, kind: input, shape index: {}]   ;;  %s1260_s6 = inlined_call_operand.vmem [shape: f32[32,1], index: 6, kind: input, shape index: {}]   ;;  %s1261_s7 = inlined_call_operand.vmem [shape: f32[3,32], index: 7, kind: input, shape index: {}]   ;;  %s1262_s8 = inlined_call_operand.vmem [shape: f32[3,1], index: 8, kind: input, shape index: {}]   ;;  %s1263_s9 = inlined_call_operand.hbm [shape: f32[3,384], index: 9, kind: output, shape index: {}]  }
   0x1   :  { %v35_v0 = vld [vmem:[%s1255_s1 + $0x10] sm:$0xff]  ;;  %v33_v1 = vld [vmem:[%s1255_s1] sm:$0xff]  ;;  %969 = vset.pattern.permute.xlu0 %v1069_v2  ;;  %967 = vset.pattern.permute.xlu1 %v1069_v2  ;;  %v34_v3 = vld [vmem:[%s1255_s1 + $0x8] sm:$0xff] }
   0x2   :  { %113 = vperm.xlu0 %969, %v35_v0   ;;  %105 = vperm.xlu1 %967, %v33_v1  }
   0x6   :  { %970 = vset.pattern.permute.xlu0 %v1070_v4  ;;  %109 = vperm.xlu1 %967, %v34_v3  }
   0x7   :  { %14 = vsyncpa [#allocation3], 0  ;;  %46 = vperm.xlu0 %970, %v33_v1   ;;  %v36_v5 = vld [vmem:[%s1255_s1 + $0x18] sm:$0xff]  ;;  %v38_v6 = vld [vmem:[%s1256_s2 + $0x8] sm:$0xff]  ;;  %vm243_vm0 = vcmask 261120   ;;  %v1071_v20 = vmov 0.0   ;;  %v65_v21 = vlaneseq }
   0x8   :  { %v37_v7 = vld [vmem:[%s1256_s2] sm:$0xff]  ;;  %v39_v9 = vld [vmem:[%s1256_s2 + $0x10] sm:$0xff]  ;;  %v40_v11 = vld [vmem:[%s1256_s2 + $0x18] sm:$0xff]  ;;  %320 = vmatprep.mubr.f32.mxu0 %v1071_v20  ;;  %vm1073_vm1 = vmmov 0  }
   0x9   :  { %v219_v8 = vld [vmem:[%s1258_s4] sm:$0xff]  ;;  %v221_v10 = vld [vmem:[%s1258_s4 + $0x10] sm:$0xff]  ;;  %v220_v13 = vld [vmem:[%s1258_s4 + $0x8] sm:$0xff]  ;;  %v66_v22 = vshrl.u32 %v65_v21, 7 }
   0xa   :  { %968 = vset.pattern.permute.xlu1 %v1070_v4  ;;  %v446_v12 = vld [vmem:[%s1260_s6] sm:$0xff]  ;;  %v448_v14 = vld [vmem:[%s1260_s6 + $0x10] sm:$0xff]  ;;  %v222_v15 = vld [vmem:[%s1258_s4 + $0x18] sm:$0xff] }
   0xb   :  { %51 = vperm.xlu0 %970, %v34_v3   ;;  %61 = vperm.xlu1 %968, %v36_v5   ;;  %v42_v16 = vld [vmem:[%s1262_s8] sm:$0x7]  ;;  %v447_v17 = vld [vmem:[%s1260_s6 + $0x8] sm:$0xff]  ;;  %v449_v18 = vld [vmem:[%s1260_s6 + $0x18] sm:$0xff]  ;;  %v67_v25 = vsub.s32 0, %v66_v22  ;;  %v71_v26 = vsub.s32 2, %v66_v22 }
   0xc   :  { %v1179_v19 = vld [vmem:[%s1257_s3] sm:$0xff]  ;;  %v75_v27 = vsub.s32 4, %v66_v22  ;;  %v122_v28 = vsub.s32 1, %v66_v22  ;;  %v126_v29 = vsub.s32 3, %v66_v22  ;;  %v130_v31 = vsub.s32 5, %v66_v22 }
   0xd   :  { %884 = vmatprep.mubr.msk.f32.mxu1 %vm243_vm0, %v1179_v19  ;;  %v43_v30 = vld [vmem:[%s1254_s0] sm:$0x3f] }
   0xe   :  { %v68_v33 = vrot.slane %v43_v30, %v67_v25  ;;  %v72_v34 = vrot.slane %v43_v30, %v71_v26  ;;  %v76_v36 = vrot.slane %v43_v30, %v75_v27  ;;  %v123_v37 = vrot.slane %v43_v30, %v122_v28 }
   0xf   :  { %56 = vperm.xlu0 %970, %v35_v0   ;;  %971 = vset.pattern.permute.xlu1 %v1069_v2  ;;  %v127_v38 = vrot.slane %v43_v30, %v126_v29  ;;  %v131_v39 = vrot.slane %v43_v30, %v130_v31 }
  0x10   :  { %117 = vperm.xlu1 %971, %v36_v5   ;;  %v83_v40 = vrot.slane %v68_v33, %v67_v25  ;;  %v87_v41 = vrot.slane %v72_v34, %v67_v25  ;;  %v91_v44 = vrot.slane %v76_v36, %v67_v25  ;;  %v138_v45 = vrot.slane %v123_v37, %v122_v28 }
  0x11   :  { %v142_v46 = vrot.slane %v127_v38, %v122_v28  ;;  %v146_v47 = vrot.slane %v131_v39, %v122_v28 }
  0x13   :  { %178 = vperm.xlu0 %970, %v38_v6  }
  0x14   :  { %972 = vset.pattern.permute.xlu1 %v1070_v4 }
  0x15   :  { %173 = vperm.xlu1 %972, %v37_v7  }
  0x17   :  { %225 = vperm.xlu0 %970, %v219_v8  }
  0x19   :  { %183 = vperm.xlu1 %972, %v39_v9  }
  0x1b   :  { %235 = vperm.xlu0 %970, %v221_v10  }
  0x1d   :  { %188 = vperm.xlu1 %972, %v40_v11  }
  0x1f   :  { %452 = vperm.xlu0 %970, %v446_v12  }
  0x21   :  { %230 = vperm.xlu1 %972, %v220_v13  }
  0x23   :  { %462 = vperm.xlu0 %970, %v448_v14  }
  0x25   :  { %240 = vperm.xlu1 %972, %v222_v15  }
  0x27   :  { %670 = vperm.xlu0 %970, %v42_v16  }
  0x29   :  { %457 = vperm.xlu1 %972, %v447_v17  }
  0x2d   :  { %467 = vperm.xlu1 %972, %v449_v18  }
  0x81   :  { %v106_v23 = vpop.permute.xlu1 %105  ;;  %v114_v24 = vpop.permute.xlu0 %113 }
  0x82   :  { %v147_v58 = vmul.f32 %v138_v45, %v106_v23  ;;  %v148_v59 = vmul.f32 %v142_v46, %v106_v23  ;;  %v149_v0 = vmul.f32 %v146_v47, %v106_v23  ;;  %v153_v9 = vmul.f32 %v138_v45, %v114_v24 }
  0x83   :  { %v154_v10 = vmul.f32 %v142_v46, %v114_v24  ;;  %v155_v14 = vmul.f32 %v146_v47, %v114_v24 }
  0x85   :  { %v110_v32 = vpop.permute.xlu1 %109 }
  0x86   :  { %v47_v35 = vpop.permute.xlu0 %46  ;;  %v150_v54 = vmul.f32 %v138_v45, %v110_v32  ;;  %v151_v55 = vmul.f32 %v142_v46, %v110_v32  ;;  %v152_v56 = vmul.f32 %v146_v47, %v110_v32 }
  0x87   :  { %v92_v51 = vmul.f32 %v83_v40, %v47_v35  ;;  %v93_v52 = vmul.f32 %v87_v41, %v47_v35  ;;  %v94_v60 = vmul.f32 %v91_v44, %v47_v35 }
  0x89   :  { %v159_v3 = vadd.f32 %v147_v58, %v92_v51  ;;  %v160_v4 = vadd.f32 %v148_v59, %v93_v52  ;;  %v161_v12 = vadd.f32 %v149_v0, %v94_v60  ;;  %v216_v58 = vld [vmem:[%s1257_s3 + $0x8] sm:$0xff]  ;;  %v217_v59 = vld [vmem:[%s1257_s3 + $0x10] sm:$0xff]  ;;  %v218_v60 = vld [vmem:[%s1257_s3 + $0x18] sm:$0xff] }
  0x8a   :  { %v52_v42 = vpop.permute.xlu0 %51  ;;  %v62_v43 = vpop.permute.xlu1 %61 }
  0x8b   :  { %v95_v48 = vmul.f32 %v83_v40, %v52_v42  ;;  %v96_v49 = vmul.f32 %v87_v41, %v52_v42  ;;  %v97_v50 = vmul.f32 %v91_v44, %v52_v42  ;;  %v101_v26 = vmul.f32 %v83_v40, %v62_v43 }
  0x8c   :  { %v102_v27 = vmul.f32 %v87_v41, %v62_v43  ;;  %v103_v30 = vmul.f32 %v91_v44, %v62_v43 }
  0x8d   :  { %v162_v61 = vadd.f32 %v150_v54, %v95_v48  ;;  %v163_v62 = vadd.f32 %v151_v55, %v96_v49  ;;  %v164_v63 = vadd.f32 %v152_v56, %v97_v50 }
  0x8e   :  { %v57_v53 = vpop.permute.xlu0 %56 }
  0x8f   :  { %v118_v57 = vpop.permute.xlu1 %117  ;;  %v98_v1 = vmul.f32 %v83_v40, %v57_v53  ;;  %v99_v5 = vmul.f32 %v87_v41, %v57_v53  ;;  %v100_v11 = vmul.f32 %v91_v44, %v57_v53 }
  0x90   :  { %v156_v17 = vmul.f32 %v138_v45, %v118_v57  ;;  %v157_v18 = vmul.f32 %v142_v46, %v118_v57  ;;  %v158_v22 = vmul.f32 %v146_v47, %v118_v57 }
  0x91   :  { %v165_v23 = vadd.f32 %v153_v9, %v98_v1  ;;  %v166_v25 = vadd.f32 %v154_v10, %v99_v5  ;;  %v167_v28 = vadd.f32 %v155_v14, %v100_v11 }
  0x92   :  { %v179_v2 = vpop.permute.xlu0 %178  ;;  %v168_v33 = vadd.f32 %v156_v17, %v101_v26  ;;  %v169_v34 = vadd.f32 %v157_v18, %v102_v27  ;;  %v170_v35 = vadd.f32 %v158_v22, %v103_v30 }
  0x93   :  { %v194_v6 = vadd.f32 %v179_v2, %v162_v61  ;;  %v195_v7 = vadd.f32 %v179_v2, %v163_v62  ;;  %v196_v8 = vadd.f32 %v179_v2, %v164_v63 }
  0x94   :  { %v174_v13 = vpop.permute.xlu1 %173 }
  0x95   :  { %973 = vtanh.f32 %v194_v6  ;;  %v191_v15 = vadd.f32 %v174_v13, %v159_v3  ;;  %v192_v16 = vadd.f32 %v174_v13, %v160_v4  ;;  %v193_v21 = vadd.f32 %v174_v13, %v161_v12 }
  0x96   :  { %975 = vtanh.f32 %v195_v7  ;;  %v226_v62 = vpop.permute.xlu0 %225 }
  0x97   :  { %977 = vtanh.f32 %v196_v8 }
  0x98   :  { %979 = vtanh.f32 %v191_v15  ;;  %v184_v29 = vpop.permute.xlu1 %183 }
  0x99   :  { %981 = vtanh.f32 %v192_v16  ;;  %v197_v31 = vadd.f32 %v184_v29, %v165_v23  ;;  %v198_v24 = vadd.f32 %v184_v29, %v166_v25  ;;  %v199_v32 = vadd.f32 %v184_v29, %v167_v28 }
  0x9a   :  { %983 = vtanh.f32 %v193_v21  ;;  %v236_v12 = vpop.permute.xlu0 %235 }
  0x9b   :  { %985 = vtanh.f32 %v197_v31 }
  0x9c   :  { %v189_v36 = vpop.permute.xlu1 %188  ;;  %987 = vtanh.f32 %v198_v24 }
  0x9d   :  { %v200_v37 = vadd.f32 %v189_v36, %v168_v33  ;;  %v201_v38 = vadd.f32 %v189_v36, %v169_v34  ;;  %v202_v39 = vadd.f32 %v189_v36, %v170_v35  ;;  %989 = vtanh.f32 %v199_v32 }
  0x9f   :  { %v974_v40 = vpop.eup %973  ;;  %991 = vtanh.f32 %v200_v37 }
  0xa0   :  { %v976_v41 = vpop.eup %975  ;;  %993 = vtanh.f32 %v201_v38  ;;  %v231_v61 = vpop.permute.xlu1 %230 }
  0xa1   :  { %v978_v42 = vpop.eup %977  ;;  %995 = vtanh.f32 %v202_v39 }
  0xa2   :  { %v980_v43 = vpop.eup %979 }
  0xa3   :  { %v982_v44 = vpop.eup %981  ;;  %v917_v45 = vpack.c.bf16 %v974_v40, %v980_v43  ;;  %v444_v43 = vld [vmem:[%s1259_s5 + $0x10] sm:$0xff] }
  0xa4   :  { %v984_v46 = vpop.eup %983  ;;  %v915_v47 = vpack.c.bf16 %v976_v41, %v982_v44  ;;  %v241_v7 = vpop.permute.xlu1 %240  ;;  %v443_v41 = vld [vmem:[%s1259_s5 + $0x8] sm:$0xff] }
  0xa5   :  { %v923_v48 = vpack.c.bf16 %v978_v42, %v984_v46  ;;  %v986_v49 = vpop.eup %985 }
  0xa6   :  { %916 = vmatprep.subr.bf16.mxu0 %v915_v47  ;;  %v988_v50 = vpop.eup %987  ;;  %v445_v47 = vld [vmem:[%s1259_s5 + $0x18] sm:$0xff] }
  0xa7   :  { %924 = vmatprep.subr.bf16.mxu1 %v923_v48  ;;  %918 = vmatpush1.bf16.msra.mxu0 %v917_v45  ;;  %v990_v51 = vpop.eup %989 }
  0xa8   :  { %926 = vmatpush3.bf16.msra.mxu1 %v923_v48  ;;  %v1072_v48 = vmov 0.0|0.0  }
  0xa9   :  { %v992_v52 = vpop.eup %991 }
  0xaa   :  { %v994_v53 = vpop.eup %993  ;;  %v921_v54 = vpack.c.bf16 %v992_v52, %v986_v49  ;;  %v458_v49 = vpop.permute.xlu1 %457 }
  0xab   :  { %v996_v55 = vpop.eup %995  ;;  %v919_v56 = vpack.c.bf16 %v994_v53, %v988_v50  ;;  %v453_v50 = vpop.permute.xlu0 %452 }
  0xac   :  { %v927_v57 = vpack.c.bf16 %v996_v55, %v990_v51 }
  0xad   :  { %920 = vmatprep.subr.bf16.mxu0 %v919_v56 }
  0xae   :  { %928 = vmatprep.subr.bf16.mxu1 %v927_v57  ;;  %922 = vmatpush1.bf16.msra.mxu0 %v921_v54  ;;  %v468_v55 = vpop.permute.xlu1 %467 }
  0xaf   :  { %930 = vmatpush3.bf16.msra.mxu1 %v927_v57  ;;  %v463_v57 = vpop.permute.xlu0 %462 }
  0xb1   :  { %837 = vmatmul.mubr.msk.f32.vlgmr.msra.gmra.mrb[0].mxu0 %vm243_vm0, %v1179_v19  ;;  %v1211_v19 = vld [vmem:[%s1259_s5] sm:$0xff] }
  0xb2   :  { %885 = vmatmul.mubr.msk.f32.vlgmr.msra.gmra.mrb[0].mxu1 %vm243_vm0, %v216_v58  ;;  %326 = vmatprep.mubr.f32.mxu0 %v1071_v20 }
  0xb3   :  { %887 = vmatprep.mubr.msk.f32.mxu1 %vm243_vm0, %v217_v59 }
  0xb5   :  { %838 = vmatmul.mubr.msk.f32.gmra.mrb[2].mxu0 %vm243_vm0, %v216_v58 }
  0xb6   :  { %888 = vmatmul.mubr.msk.f32.gmra.mrb[2].mxu1 %vm243_vm0, %v218_v60  ;;  %332 = vmatprep.mubr.f32.mxu0 %v1071_v20 }
  0xb7   :  { %546 = vmatprep.mubr.f32.mxu1 %v1071_v20 }
  0xb9   :  { %839 = vmatmul.mubr.msk.f32.gmra.mrb[4].mxu0 %vm243_vm0, %v217_v59 }
  0xba   :  { %338 = vmatprep.mubr.f32.mxu0 %v1071_v20 }
  0xbd   :  { %840 = vmatmul.mubr.msk.f32.gmra.mrb[6].mxu0 %vm243_vm0, %v218_v60 }
  0xbe   :  { %898 = vmatprep.mubr.msk.f32.mxu0 %vm243_vm0, %v1211_v19 }
 0x184   :  { %v322_v63 = vpop.f32.mrb[0].mxu0 }
 0x185   :  { %v323_v0 = vadd.f32 %v322_v63, %v226_v62  ;;  %v886_v1 = vpop.f32.mrb[0].mxu1  ;;  %v324_v2 = vpop.f32.mrb[1].mxu0 }
 0x186   :  { %v417_v3 = vadd.f32 %v886_v1, %v231_v61  ;;  %v325_v4 = vadd.f32 %v324_v2, %v226_v62  ;;  %v411_v5 = vpop.f32.mrb[1].mxu1 }
 0x187   :  { %997 = vtanh.f32 %v323_v0  ;;  %v412_v6 = vadd.f32 %v411_v5, %v226_v62 }
 0x188   :  { %999 = vtanh.f32 %v417_v3  ;;  %v328_v8 = vpop.f32.mrb[2].mxu0 }
 0x189   :  { %1001 = vtanh.f32 %v325_v4  ;;  %v329_v9 = vadd.f32 %v328_v8, %v231_v61  ;;  %v889_v10 = vpop.f32.mrb[2].mxu1  ;;  %v330_v11 = vpop.f32.mrb[3].mxu0 }
 0x18a   :  { %1003 = vtanh.f32 %v412_v6  ;;  %v427_v13 = vadd.f32 %v889_v10, %v241_v7  ;;  %v331_v14 = vadd.f32 %v330_v11, %v231_v61  ;;  %v421_v15 = vpop.f32.mrb[3].mxu1 }
 0x18b   :  { %1005 = vtanh.f32 %v329_v9  ;;  %v422_v16 = vadd.f32 %v421_v15, %v236_v12 }
 0x18c   :  { %1007 = vtanh.f32 %v427_v13  ;;  %v334_v17 = vpop.f32.mrb[4].mxu0 }
 0x18d   :  { %1009 = vtanh.f32 %v331_v14  ;;  %v335_v18 = vadd.f32 %v334_v17, %v236_v12  ;;  %v336_v21 = vpop.f32.mrb[5].mxu0 }
 0x18e   :  { %1011 = vtanh.f32 %v422_v16  ;;  %v337_v22 = vadd.f32 %v336_v21, %v236_v12 }
 0x18f   :  { %1013 = vtanh.f32 %v335_v18  ;;  %v41_v18 = vld [vmem:[%s1261_s7] sm:$0x7]  ;;  %s1074_s7 = smov [#allocation2]  }
 0x190   :  { %v340_v23 = vpop.f32.mrb[6].mxu0  ;;  %1015 = vtanh.f32 %v337_v22  ;;  %s829_s12 = sshll.u32 %s1074_s7, 4  ;;  %s830_s12 = int_to_ptr.vmem [resolvable:$true] %s829_s12 }
 0x191   :  { %v998_v25 = vpop.eup %997  ;;  %v341_v26 = vadd.f32 %v340_v23, %v241_v7  ;;  %v342_v27 = vpop.f32.mrb[7].mxu0  ;;  %s1045_s13 = scalar_lea.vmem %s830_s12, 192  ;;  %p1050_p1 = scmp.lt.s32.totalorder %s830_s12, %s830_s12 }
 0x192   :  { %v1000_v28 = vpop.eup %999  ;;  %v343_v29 = vadd.f32 %v342_v27, %v241_v7  ;;  %p1046_p0 = scmp.ne.s32.totalorder %s830_s12, %s1045_s13  ;;  %p1051_p2 = scmp.lt.s32.totalorder %s1045_s13, %s1045_s13 }
 0x193   :  { %v1002_v30 = vpop.eup %1001  ;;  %1017 = vtanh.f32 %v341_v26 }
 0x194   :  { %v1004_v31 = vpop.eup %1003  ;;  %1019 = vtanh.f32 %v343_v29  ;;  %p1052_p3 = por %p1051_p2, %p1050_p1 }
 0x195   :  { %v1006_v24 = vpop.eup %1005  ;;  %v939_v32 = vpack.c.bf16 %v1000_v28, %v1004_v31 }
 0x196   :  { %v1008_v33 = vpop.eup %1007  ;;  %v933_v34 = vpack.c.bf16 %v1006_v24, %v998_v25  ;;  %p1053_p4 = pnand %p1052_p3, %p1046_p0 }
 0x197   :  { %v1010_v35 = vpop.eup %1009  ;;  %940 = vmatprep.subr.bf16.mxu0 %v939_v32 }
 0x198   :  { %v1012_v36 = vpop.eup %1011  ;;  %942 = vmatpush3.bf16.msra.mxu0 %v939_v32  ;;  %v931_v37 = vpack.c.bf16 %v1010_v35, %v1002_v30  ;;  %v671_v32 = vpop.permute.xlu0 %670 }
 0x199   :  { %v943_v38 = vpack.c.bf16 %v1008_v33, %v1012_v36  ;;  %v1014_v39 = vpop.eup %1013 }
 0x19a   :  { %932 = vmatprep.subr.bf16.mxu1 %v931_v37  ;;  %v1016_v40 = vpop.eup %1015 }
 0x19b   :  { %944 = vmatprep.subr.bf16.mxu0 %v943_v38  ;;  %934 = vmatpush1.bf16.msra.mxu1 %v933_v34 }
 0x19c   :  { %946 = vmatpush3.bf16.msra.mxu0 %v943_v38 }
 0x19d   :  { %v1018_v42 = vpop.eup %1017 }
 0x19e   :  { %v1020_v44 = vpop.eup %1019  ;;  %v937_v45 = vpack.c.bf16 %v1018_v42, %v1014_v39 }
 0x19f   :  { %899 = vmatmul.mubr.msk.f32.vlgmr.msra.gmra.mrb[8].mxu0 %vm243_vm0, %v443_v41  ;;  %v935_v46 = vpack.c.bf16 %v1020_v44, %v1016_v40 }
 0x1a0   :  { %901 = vmatprep.mubr.msk.f32.mxu0 %vm243_vm0, %v444_v43 }
 0x1a1   :  { %936 = vmatprep.subr.bf16.mxu1 %v935_v46 }
 0x1a2   :  { %938 = vmatpush1.bf16.msra.mxu1 %v937_v45 }
 0x1a3   :  { %902 = vmatmul.mubr.msk.f32.gmra.mrb[10].mxu0 %vm243_vm0, %v445_v47  ;;  %955 = vmatprep.subr.bf16.mxu1 %v1072_v48 }
 0x1a4   :  { %740 = vmatprep.mubr.f32.mxu0 %v1071_v20 }
 0x1a5   :  { %845 = vmatmul.mubr.msk.f32.vlgmr.msra.gmra.mrb[4].mxu1 %vm243_vm0, %v1211_v19 }
 0x1a6   :  { %552 = vmatprep.mubr.f32.mxu1 %v1071_v20 }
 0x1a9   :  { %846 = vmatmul.mubr.msk.f32.gmra.mrb[6].mxu1 %vm243_vm0, %v443_v41 }
 0x1aa   :  { %558 = vmatprep.mubr.f32.mxu1 %v1071_v20 }
 0x1ad   :  { %847 = vmatmul.mubr.msk.f32.gmra.mrb[8].mxu1 %vm243_vm0, %v444_v43 }
 0x1ae   :  { %564 = vmatprep.mubr.f32.mxu1 %v1071_v20 }
 0x1b1   :  { %848 = vmatmul.mubr.msk.f32.gmra.mrb[10].mxu1 %vm243_vm0, %v445_v47 }
 0x1b2   :  { %912 = vmatprep.mubr.msk.f32.mxu1 %vm1073_vm1, %v1071_v20 }
 0x272   :  { %v900_v51 = vpop.f32.mrb[8].mxu0 }
 0x273   :  { %v643_v52 = vadd.f32 %v900_v51, %v458_v49  ;;  %v637_v53 = vpop.f32.mrb[9].mxu0 }
 0x274   :  { %v638_v54 = vadd.f32 %v637_v53, %v453_v50 }
 0x275   :  { %1021 = vtanh.f32 %v643_v52 }
 0x276   :  { %1023 = vtanh.f32 %v638_v54  ;;  %v903_v56 = vpop.f32.mrb[10].mxu0 }
 0x277   :  { %v653_v58 = vadd.f32 %v903_v56, %v468_v55  ;;  %v647_v59 = vpop.f32.mrb[11].mxu0 }
 0x278   :  { %v648_v60 = vadd.f32 %v647_v59, %v463_v57  ;;  %v548_v19 = vpop.f32.mrb[4].mxu1 }
 0x279   :  { %1025 = vtanh.f32 %v653_v58  ;;  %v549_v61 = vadd.f32 %v548_v19, %v453_v50  ;;  %v550_v62 = vpop.f32.mrb[5].mxu1 }
 0x27a   :  { %1027 = vtanh.f32 %v648_v60  ;;  %v551_v20 = vadd.f32 %v550_v62, %v453_v50 }
 0x27b   :  { %1029 = vtanh.f32 %v549_v61 }
 0x27c   :  { %v554_v63 = vpop.f32.mrb[6].mxu1  ;;  %1031 = vtanh.f32 %v551_v20 }
 0x27d   :  { %v555_v0 = vadd.f32 %v554_v63, %v458_v49  ;;  %v556_v1 = vpop.f32.mrb[7].mxu1 }
 0x27e   :  { %v557_v2 = vadd.f32 %v556_v1, %v458_v49 }
 0x27f   :  { %v1022_v3 = vpop.eup %1021  ;;  %1033 = vtanh.f32 %v555_v0 }
 0x280   :  { %v1024_v4 = vpop.eup %1023  ;;  %1035 = vtanh.f32 %v557_v2  ;;  %v560_v5 = vpop.f32.mrb[8].mxu1 }
 0x281   :  { %v561_v6 = vadd.f32 %v560_v5, %v463_v57  ;;  %v562_v7 = vpop.f32.mrb[9].mxu1  ;;  %v956_v8 = vpack.c.bf16 %v1022_v3, %v1024_v4 }
 0x282   :  { %v563_v9 = vadd.f32 %v562_v7, %v463_v57 }
 0x283   :  { %v1026_v10 = vpop.eup %1025  ;;  %957 = vmatpush3.bf16.msra.mxu1 %v956_v8  ;;  %1037 = vtanh.f32 %v561_v6 }
 0x284   :  { %v1028_v11 = vpop.eup %1027  ;;  %v566_v12 = vpop.f32.mrb[10].mxu1  ;;  %958 = vmatprep.subr.bf16.mxu1 %v1072_v48  ;;  %1039 = vtanh.f32 %v563_v9 }
 0x285   :  { %v567_v13 = vadd.f32 %v566_v12, %v468_v55  ;;  %v568_v14 = vpop.f32.mrb[11].mxu1  ;;  %v959_v15 = vpack.c.bf16 %v1026_v10, %v1028_v11  ;;  %v1030_v17 = vpop.eup %1029 }
 0x286   :  { %v569_v16 = vadd.f32 %v568_v14, %v468_v55  ;;  %v1032_v21 = vpop.eup %1031 }
 0x287   :  { %1041 = vtanh.f32 %v567_v13  ;;  %960 = vmatpush3.bf16.msra.mxu1 %v959_v15 }
 0x288   :  { %1043 = vtanh.f32 %v569_v16 }
 0x289   :  { %v1034_v22 = vpop.eup %1033 }
 0x28a   :  { %v1036_v23 = vpop.eup %1035  ;;  %913 = vmatmul.mubr.msk.f32.vlgmr.msra.gmra.mrb[12].mxu1 %vm243_vm0, %v41_v18  ;;  %v949_v25 = vpack.c.bf16 %v1034_v22, %v1030_v17 }
 0x28b   :  { %v947_v26 = vpack.c.bf16 %v1036_v23, %v1032_v21 }
 0x28d   :  { %948 = vmatprep.subr.bf16.mxu0 %v947_v26  ;;  %v1038_v27 = vpop.eup %1037 }
 0x28e   :  { %950 = vmatpush1.bf16.msra.mxu0 %v949_v25  ;;  %v1040_v28 = vpop.eup %1039 }
 0x291   :  { %v1042_v29 = vpop.eup %1041 }
 0x292   :  { %v1044_v30 = vpop.eup %1043  ;;  %v953_v31 = vpack.c.bf16 %v1042_v29, %v1038_v27 }
 0x293   :  { %v951_v24 = vpack.c.bf16 %v1044_v30, %v1040_v28 }
 0x295   :  { %952 = vmatprep.subr.bf16.mxu0 %v951_v24 }
 0x296   :  { %954 = vmatpush1.bf16.msra.mxu0 %v953_v31 }
 0x299   :  { %853 = vmatmul.mubr.msk.f32.vlgmr.msra.gmra.mrb[12].mxu0 %vm243_vm0, %v41_v18 }
 0x35d   :  { %v813_v33 = vpop.f32.mrb[12].mxu1 }
 0x35e   :  { %v814_v34 = vadd.f32 %v813_v33, %v671_v32  ;;  %v914_v35 = vpop.f32.mrb[13].mxu1 }
 0x360   :  { %822 = vst [vmem:[#allocation2 + $0x8] sm:$0x7] %v814_v34 }
 0x36c   :  { %v742_v36 = vpop.f32.mrb[12].mxu0 }
 0x36d   :  { %v743_v37 = vadd.f32 %v742_v36, %v671_v32  ;;  %v744_v38 = vpop.f32.mrb[13].mxu0 }
 0x36e   :  { %v745_v39 = vadd.f32 %v744_v38, %v671_v32 }
 0x370   :  { %v819_v40 = vcombine.low %v743_v37, %v745_v39 }
 0x372   :  { %821 = vst [vmem:[#allocation2] sm:$0x77] %v819_v40 }
 0x373   :  { %1056 = shalt.err (!%p1053_p4)
}
 0x374   :  { %s1057_s15 = scalar_lea.hbm %s1263_s9, 192 }
 0x375   :  { %p1058_p5 = scmp.ne.s32.totalorder %s1263_s9, %s1057_s15  ;;  %p1061_p6 = scmp.lt.u32.totalorder %s1057_s15, %s1263_s9 }
 0x377   :  { %p1063_p7 = pnand %p1061_p6, %p1058_p5 }
 0x379   :  { %1066 = shalt.err (!%p1063_p7)
}
 0x37a   :  { %832 = dma.vmem_to_hbm [thread:$0]  %s830_s12, 192, %s1263_s9, [#allocation3]  }
 0x37b   :  { %1067 = dma.done.wait [#allocation3], 192  }
 0x37c   :  { %1068 = vsyncadd [#allocation3], 4294967104 }
 0x37d   :  { %836 = vsyncpa [#allocation3], 1 }

</bundles_post_ra>
